<compile_context>
chip_gen: v5e
topology: v5e:2x2
jax: 0.10.0
libtpu: 0.0.40
codegen_flags: <defaults>
</compile_context>

<pallas_src>
import functools

import jax
import jax.numpy as jnp
from jax.experimental import pallas as pl
from jax.experimental.pallas import tpu as pltpu


def _round_up(x: int, m: int) -> int:
    return (x + m - 1) // m * m


def _tiled_bytes(rows: int, cols: int, dtype) -> int:
    """VMEM footprint of a (rows, cols) block after hardware (sublane,lane) tiling."""
    itemsize = jnp.dtype(dtype).itemsize
    sublane = max(8, 32 // max(itemsize, 1))      # 8 (f32) / 16 (bf16) / 32 (i8)
    return _round_up(max(rows, 1), sublane) * _round_up(max(cols, 1), 128) * itemsize


def _vmem_capacity_bytes() -> int:
    try:
        cap = getattr(pltpu.get_tpu_info(), "vmem_capacity_bytes", None)
        if cap:
            return int(cap)
    except Exception:
        pass
    return 64 * 1024 * 1024   # conservative fallback (v7x per-TensorCore)


def _tensorcores_per_chip() -> int:
    try:
        kind = jax.devices()[0].device_kind.lower()
        if "v7" in kind:
            return 2
    except Exception:
        pass
    return 1


def _dgm_kernel(x1_ref, x2_ref, w1_ref, w2_ref, b_ref, *rest,
                activation: str, has_activation_par: bool, compute_dtype):
    # x1_ref: (tb, in1)   x2_ref: (tb, in2)
    # w1_ref: (in1, tn)   w2_ref: (in2, tn)   b_ref: (1, tn)
    # [apar_ref: SMEM (1,1)]   o_ref: (tb, tn)
    if has_activation_par:
        apar_ref, o_ref = rest
    else:
        (o_ref,) = rest

    x1 = x1_ref[...]
    x2 = x2_ref[...]
    if compute_dtype is not None and x1.dtype != compute_dtype:
        # In-kernel cast: keeps a single HBM pass while feeding the MXU bf16.
        x1 = x1.astype(compute_dtype)
        x2 = x2.astype(compute_dtype)

    # Two accumulating MXU contractions (K is tiny, MXU far from saturated;
    # this avoids the wrapper-side concat and its extra HBM pass).
    y = jnp.dot(x1, w1_ref[...], preferred_element_type=jnp.float32)
    y = y + jnp.dot(x2, w2_ref[...], preferred_element_type=jnp.float32)
    y = y + b_ref[...]                      # broadcast (1, tn) over rows

    if activation != "identity":
        if has_activation_par:
            y = apar_ref[0, 0] * y
        if activation == "tanh":
            # TODO(synk): on v5e with very large tiles the single EUP can bind
            # before HBM for tanh/sin; a VPU polynomial would relieve it.
            y = jnp.tanh(y)
        elif activation == "relu":
            y = jnp.maximum(y, 0.0)
        elif activation == "sin":
            y = jnp.sin(y)
        elif activation == "sigmoid":
            y = jax.nn.sigmoid(y)
        else:
            raise ValueError(f"unsupported activation: {activation}")

    o_ref[...] = y.astype(o_ref.dtype)


def dgm_layer_forward(input_1, input_2, w1, w2, bias,
                      activation: str = "identity",
                      activation_par=None,
                      block_batch: int = 4096,
                      compute_dtype=None):
    """Pallas implementation of DGMLayer.forward (weight_norm=False).

    input_1: (B, In1), input_2: (B, In2)
    w1: (Out, In1), w2: (Out, In2)   (PyTorch nn.Linear weight layout)
    bias: (Out,)
    compute_dtype: dtype fed to the MXU (e.g. jnp.bfloat16); accumulation is
                   always f32; the cast happens inside the kernel.
    """
    B, in1 = input_1.shape
    B2, in2 = input_2.shape
    out = w1.shape[0]
    assert B == B2
    assert w1.shape == (out, in1) and w2.shape == (out, in2)
    assert bias.shape == (out,)

    out_dtype = input_1.dtype
    x_dt = jnp.dtype(input_1.dtype)
    cdt = jnp.dtype(compute_dtype) if compute_dtype is not None else x_dt
    in_kernel_cast = cdt if cdt != x_dt else None

    # Tiny, grid-invariant preprocessing (negligible traffic).
    w1t = w1.T.astype(cdt)                        # (in1, out)
    w2t = w2.T.astype(cdt)                        # (in2, out)
    bias2d = bias.reshape(1, out).astype(jnp.float32)

    # ---- generation-aware VMEM budget --------------------------------------
    vmem_cap = _vmem_capacity_bytes()             # 128 MiB v5e/v6e, 64 MiB v7x
    budget = min(int(vmem_cap * 0.55), 96 * 1024 * 1024)
    vmem_limit = int(min(vmem_cap * 0.85, budget + 32 * 1024 * 1024))

    # ---- output-feature (N) tiling: only when the weights are large --------
    def _weight_bytes(n):
        return 2 * (_tiled_bytes(in1, n, cdt) + _tiled_bytes(in2, n, cdt)
                    + _tiled_bytes(1, n, jnp.float32))

    tn = out
    while tn > 128 and _weight_bytes(tn) > budget // 4:
        tn = _round_up(max(128, tn // 2), 128)
    grid_n = pl.cdiv(out, tn)

    # ---- batch tiling -------------------------------------------------------
    sub_b = 16                                    # safe sublane multiple (f32/bf16)
    tb = _round_up(min(block_batch, max(B, 1)), sub_b)
    # Forced 2-way split only pays off on 2-TensorCore parts (v7x megacore).
    if pl.cdiv(B, tb) == 1 and grid_n == 1 and B >= 2 * sub_b \
            and _tensorcores_per_chip() >= 2:
        tb = _round_up(pl.cdiv(B, 2), sub_b)

    def _vmem_est(t):
        return (2 * _tiled_bytes(t, in1, x_dt)
                + 2 * _tiled_bytes(t, in2, x_dt)
                + 2 * _tiled_bytes(t, tn, out_dtype)
                + _weight_bytes(tn))

    while tb > sub_b and _vmem_est(tb) > budget:
        tb = max(sub_b, _round_up(tb // 2, sub_b))
    grid_b = pl.cdiv(B, tb)                        # last block may over-run B

    # ---- activation_par: SMEM scalar, only passed when actually used -------
    has_apar = (activation_par is not None) and (activation != "identity")
    if has_apar:
        apar = jnp.asarray(activation_par, jnp.float32).reshape(-1)
        assert apar.size == 1, "only scalar activation_par is supported"
        # TODO(synk): per-feature activation_par would need a (1, out) VMEM input.
        apar = apar.reshape(1, 1)

    kernel = functools.partial(_dgm_kernel,
                               activation=activation,
                               has_activation_par=has_apar,
                               compute_dtype=in_kernel_cast)

    in_specs = [
        pl.BlockSpec((tb, in1), lambda i, j: (i, 0)),    # input_1 (streamed over batch)
        pl.BlockSpec((tb, in2), lambda i, j: (i, 0)),    # input_2 (streamed over batch)
        pl.BlockSpec((in1, tn), lambda i, j: (0, j)),    # W1^T (batch-invariant)
        pl.BlockSpec((in2, tn), lambda i, j: (0, j)),    # W2^T (batch-invariant)
        pl.BlockSpec((1, tn), lambda i, j: (0, j)),      # bias (batch-invariant)
    ]
    args = [input_1, input_2, w1t, w2t, bias2d]
    if has_apar:
        in_specs.append(pl.BlockSpec(memory_space=pltpu.MemorySpace.SMEM))
        args.append(apar)

    y = pl.pallas_call(
        kernel,
        out_shape=jax.ShapeDtypeStruct((B, out), out_dtype),
        grid_spec=pltpu.PrefetchScalarGridSpec(
            num_scalar_prefetch=0,
            grid=(grid_b, grid_n),                       # batch outer, N inner
            in_specs=in_specs,
            out_specs=pl.BlockSpec((tb, tn), lambda i, j: (i, j)),
        ),
        compiler_params=pltpu.CompilerParams(
            dimension_semantics=("parallel", "parallel"),
            vmem_limit_bytes=vmem_limit),
    )(*args)

    return y


def xavier_uniform(key, out_features, in_features, dtype=jnp.float32):
    # torch.nn.init.xavier_uniform_ with gain=1.0
    limit = (6.0 / (in_features + out_features)) ** 0.5
    return jax.random.uniform(key, (out_features, in_features),
                              minval=-limit, maxval=limit, dtype=dtype)


if __name__ == "__main__":
    # Module config (small, consistent with DGMLayer.__init__ shapes)
    in_features_1 = 32
    in_features_2 = 16
    out_features = 64
    batch = 8

    key = jax.random.PRNGKey(0)
    k1, k2, kx1, kx2 = jax.random.split(key, 4)

    # Deterministic parameter init (xavier_uniform_ for weights, bias = 0)
    w1 = xavier_uniform(k1, out_features, in_features_1)
    w2 = xavier_uniform(k2, out_features, in_features_2)
    bias = jnp.zeros((out_features,), jnp.float32)

    # Inputs
    x1 = jax.random.normal(kx1, (batch, in_features_1), jnp.float32)
    x2 = jax.random.normal(kx2, (batch, in_features_2), jnp.float32)

    # 1) Default DGMLayer: Activation.IDENTITY, no activation_par, f32 compute.
    y = dgm_layer_forward(x1, x2, w1, w2, bias, activation="identity")
    y = jax.block_until_ready(y)
    y_ref = x1 @ w1.T + x2 @ w2.T + bias
    assert y.shape == (batch, out_features)
    assert jnp.allclose(y, y_ref, atol=1e-5, rtol=1e-5)

    # 2) tanh activation with activation_par (SMEM scalar path), f32 compute.
    apar = 1.5
    y2 = dgm_layer_forward(x1, x2, w1, w2, bias,
                           activation="tanh", activation_par=apar)
    y2 = jax.block_until_ready(y2)
    y2_ref = jnp.tanh(apar * y_ref)
    assert jnp.allclose(y2, y2_ref, atol=1e-5, rtol=1e-5)

    # 3) Ragged batch (no wrapper padding) + in-kernel bf16 compute cast.
    batch_big = 300
    kb1, kb2 = jax.random.split(jax.random.PRNGKey(1))
    xb1 = jax.random.normal(kb1, (batch_big, in_features_1), jnp.float32)
    xb2 = jax.random.normal(kb2, (batch_big, in_features_2), jnp.float32)
    y3 = dgm_layer_forward(xb1, xb2, w1, w2, bias,
                           activation="tanh", activation_par=apar,
                           compute_dtype=jnp.bfloat16)
    y3 = jax.block_until_ready(y3)
    y3_ref = jnp.tanh(apar * (xb1 @ w1.T + xb2 @ w2.T + bias))
    assert y3.shape == (batch_big, out_features)
    assert jnp.allclose(y3, y3_ref, atol=5e-2, rtol=5e-2)

    print("KERNEL_OK")
</pallas_src>

<mosaic_0001>
module attributes {stable_mosaic.version = 11 : i64} {
  func.func @_dgm_kernel(%arg0: i32, %arg1: i32, %arg2: memref<16x32xf32, #tpu.memory_space<vmem>>, %arg3: memref<16x16xf32, #tpu.memory_space<vmem>>, %arg4: memref<32x64xf32, #tpu.memory_space<vmem>>, %arg5: memref<16x64xf32, #tpu.memory_space<vmem>>, %arg6: memref<1x64xf32, #tpu.memory_space<vmem>>, %arg7: memref<16x64xf32, #tpu.memory_space<vmem>>) attributes {dimension_semantics = [#tpu.dimension_semantics<parallel>, #tpu.dimension_semantics<parallel>], iteration_bounds = array<i64: 1, 1>, scalar_prefetch = 0 : i64, scratch_operands = 0 : i64, tpu.core_type = #tpu.core_type<tc>, window_params = [{transform_indices = @transform_0, window_bounds = array<i64: 16, 32>}, {transform_indices = @transform_1, window_bounds = array<i64: 16, 16>}, {transform_indices = @transform_2, window_bounds = array<i64: 32, 64>}, {transform_indices = @transform_3, window_bounds = array<i64: 16, 64>}, {transform_indices = @transform_4, window_bounds = array<i64: 1, 64>}, {transform_indices = @transform_5, window_bounds = array<i64: 16, 64>}]} {
    %c0 = arith.constant 0 : index
    %c0_0 = arith.constant 0 : index
    %0 = vector.load %arg2[%c0, %c0_0] : memref<16x32xf32, #tpu.memory_space<vmem>>, vector<16x32xf32>
    %c0_1 = arith.constant 0 : index
    %c0_2 = arith.constant 0 : index
    %1 = vector.load %arg3[%c0_1, %c0_2] : memref<16x16xf32, #tpu.memory_space<vmem>>, vector<16x16xf32>
    %c0_3 = arith.constant 0 : index
    %c0_4 = arith.constant 0 : index
    %2 = vector.load %arg4[%c0_3, %c0_4] : memref<32x64xf32, #tpu.memory_space<vmem>>, vector<32x64xf32>
    %cst = arith.constant dense<0.000000e+00> : vector<16x64xf32>
    %3 = tpu.matmul %0, %2, %cst {dimension_numbers = #tpu.dot_dimension_numbers<[1], [0], [0], [1], [0, 0, 1, 1], [], []>} : vector<16x32xf32>, vector<32x64xf32>, vector<16x64xf32> -> vector<16x64xf32>
    %c0_5 = arith.constant 0 : index
    %c0_6 = arith.constant 0 : index
    %4 = vector.load %arg5[%c0_5, %c0_6] : memref<16x64xf32, #tpu.memory_space<vmem>>, vector<16x64xf32>
    %cst_7 = arith.constant dense<0.000000e+00> : vector<16x64xf32>
    %5 = tpu.matmul %1, %4, %cst_7 {dimension_numbers = #tpu.dot_dimension_numbers<[1], [0], [0], [1], [0, 0, 1, 1], [], []>} : vector<16x16xf32>, vector<16x64xf32>, vector<16x64xf32> -> vector<16x64xf32>
    %6 = arith.addf %3, %5 : vector<16x64xf32>
    %c0_8 = arith.constant 0 : index
    %c0_9 = arith.constant 0 : index
    %7 = vector.load %arg6[%c0_8, %c0_9] : memref<1x64xf32, #tpu.memory_space<vmem>>, vector<1x64xf32>
    %8 = vector.broadcast %7 : vector<1x64xf32> to vector<16x64xf32>
    %9 = arith.addf %6, %8 : vector<16x64xf32>
    %c0_10 = arith.constant 0 : index
    %c0_11 = arith.constant 0 : index
    %10 = vector.load %arg7[%c0_10, %c0_11] : memref<16x64xf32, #tpu.memory_space<vmem>>, vector<16x64xf32>
    tpu.vector_store %arg7[%c0_10, %c0_11], %9 {strides = array<i32>} : memref<16x64xf32, #tpu.memory_space<vmem>>, vector<16x64xf32>,
    return
  }
  func.func @transform_0(%arg0: i32, %arg1: i32) -> (i32, i32) {
    %c0_i32 = arith.constant 0 : i32
    %c0_i32_0 = arith.constant 0 : i32
    return %arg0, %c0_i32 : i32, i32
  }
  func.func @transform_1(%arg0: i32, %arg1: i32) -> (i32, i32) {
    %c0_i32 = arith.constant 0 : i32
    %c0_i32_0 = arith.constant 0 : i32
    return %arg0, %c0_i32 : i32, i32
  }
  func.func @transform_2(%arg0: i32, %arg1: i32) -> (i32, i32) {
    %c0_i32 = arith.constant 0 : i32
    %c0_i32_0 = arith.constant 0 : i32
    return %c0_i32, %arg1 : i32, i32
  }
  func.func @transform_3(%arg0: i32, %arg1: i32) -> (i32, i32) {
    %c0_i32 = arith.constant 0 : i32
    %c0_i32_0 = arith.constant 0 : i32
    return %c0_i32, %arg1 : i32, i32
  }
  func.func @transform_4(%arg0: i32, %arg1: i32) -> (i32, i32) {
    %c0_i32 = arith.constant 0 : i32
    %c0_i32_0 = arith.constant 0 : i32
    return %c0_i32, %arg1 : i32, i32
  }
  func.func @transform_5(%arg0: i32, %arg1: i32) -> (i32, i32) {
    %c0_i32 = arith.constant 0 : i32
    return %arg0, %arg1 : i32, i32
  }
}

</mosaic_0001>

<bundles_post_ra>
// kernel: tpu_custom_call.1
= control target key start
LH: loop header
LB: loop body
LE: loop exit
PB: predicated region body
PF: predicated region fallthrough
CT: control target
= control target key end

     0   :  { %10 = vsyncpa [#allocation3], 0  ;;  %s402_s0 = inlined_call_operand.hbm [shape: f32[8,32], index: 0, kind: input, shape index: {}]   ;;  %s403_s1 = inlined_call_operand.hbm [shape: f32[8,16], index: 1, kind: input, shape index: {}]   ;;  %s404_s2 = inlined_call_operand.hbm [shape: f32[32,64], index: 2, kind: input, shape index: {}]   ;;  %s405_s3 = inlined_call_operand.hbm [shape: f32[16,64], index: 3, kind: input, shape index: {}]   ;;  %s406_s4 = inlined_call_operand.vmem [shape: f32[1,64], index: 4, kind: input, shape index: {}]   ;;  %s407_s5 = inlined_call_operand.hbm [shape: f32[8,64], index: 5, kind: output, shape index: {}]  }
   0x1   :  { %11 = vsyncpa [#allocation6], 0 }
   0x2   :  { %12 = vsyncpa [#allocation9], 0 }
   0x3   :  { %13 = vsyncpa [#allocation4], 0 }
   0x4   :  { %17 = vsyncadd [#allocation3], 128  ;;  %s18_s20 = sshll.u32 %s402_s0, 4  ;;  %s330_s21 = smov [#allocation2]   ;;  %s19_s20 = int_to_ptr.hbm [resolvable:$true] %s18_s20 }
   0x5   :  { %s20_s22 = sshll.u32 %s330_s21, 4  ;;  %s331_s23 = smov 128   ;;  %s21_s22 = int_to_ptr.vmem [resolvable:$true] %s20_s22 }
   0x6   :  { %s332_s24 = smov 8  }
   0x7   :  { %26 = dma.hbm_to_vmem [thread:$0]  %s19_s20, 128, %s21_s22, [#allocation3], %s331_s23, %s331_s23, %s332_s24  }
   0x8   :  { %30 = vsyncadd [#allocation6], 128  ;;  %s31_s27 = sshll.u32 %s403_s1, 4  ;;  %s333_s28 = smov [#allocation5]   ;;  %s32_s27 = int_to_ptr.hbm [resolvable:$true] %s31_s27 }
   0x9   :  { %s33_s29 = sshll.u32 %s333_s28, 4  ;;  %s44_s6 = sshll.u32 %s404_s2, 4  ;;  %s34_s29 = int_to_ptr.vmem [resolvable:$true] %s33_s29  ;;  %s45_s6 = int_to_ptr.hbm [resolvable:$true] %s44_s6 }
   0xa   :  { %39 = dma.hbm_to_vmem [thread:$0]  %s32_s27, 128, %s34_s29, [#allocation6], %s331_s23, %s331_s23, %s332_s24  }
   0xb   :  { %s334_s7 = smov [#allocation7]   ;;  %s57_s11 = sshll.u32 %s405_s3, 4  ;;  %s58_s11 = int_to_ptr.hbm [resolvable:$true] %s57_s11 }
   0xc   :  { %s46_s8 = sshll.u32 %s334_s7, 4  ;;  %s335_s1 = smov [#allocation8]   ;;  %s47_s8 = int_to_ptr.vmem [resolvable:$true] %s46_s8 }
   0xd   :  { %52 = dma.hbm_to_vmem [thread:$0]  %s45_s6, 512, %s47_s8, [#allocation6], %s331_s23, %s331_s23, %s332_s24  }
   0xe   :  { %s59_s12 = sshll.u32 %s335_s1, 4  ;;  %s60_s12 = int_to_ptr.vmem [resolvable:$true] %s59_s12 }
   0xf   :  { %65 = dma.hbm_to_vmem [thread:$0]  %s58_s11, 256, %s60_s12, [#allocation9], %s331_s23, %s331_s23, %s332_s24  }
  0x10   :  { %322 = dma.done.wait [#allocation3], 256  }
  0x11   :  { %323 = vsyncadd [#allocation3], 4294967040 }
  0x12   :  { %324 = dma.done.wait [#allocation6], 768  }
  0x13   :  { %325 = vsyncadd [#allocation6], 4294966528 }
  0x14   :  { %326 = dma.done.wait [#allocation9], 256  }
  0x15   :  { %327 = vsyncadd [#allocation9], 4294967040  ;;  %v91_v0 = vld [vmem:[#allocation7 + $0x18] sm:$0xff]  ;;  %v90_v1 = vld [vmem:[#allocation7 + $0x10] sm:$0xff]  ;;  %vm94_vm0 = vcmask 130048   ;;  %vm124_vm1 = vcmask 261120  }
  0x16   :  { %v93_v2 = vld [vmem:[#allocation8 + $0x8] sm:$0xff]  ;;  %190 = vmatpush.msra.mxu2 %v91_v0  ;;  %v92_v3 = vld [vmem:[#allocation8] sm:$0xff]  ;;  %143 = vmatpush.msra.mxu1 %v91_v0  ;;  %v87_v5 = vld [vmem:[#allocation5 + $0x8] sm:$0xff]  ;;  %vm160_vm2 = vcmask 523264  }
  0x17   :  { %188 = vmatpush.msra.mxu3 %v93_v2  ;;  %v89_v4 = vld [vmem:[#allocation7 + $0x8] sm:$0xff]  ;;  %115 = vmatpush.msra.mxu0 %v93_v2  ;;  %v86_v6 = vld [vmem:[#allocation5] sm:$0xff]  ;;  %v88_v7 = vld [vmem:[#allocation7] sm:$0xff] }
  0x18   :  { %191 = vmatpush.msra.mxu2 %v90_v1  ;;  %144 = vmatpush.msra.mxu1 %v90_v1  ;;  %v85_v8 = vld [vmem:[#allocation2 + $0x8] sm:$0xff]  ;;  %v84_v9 = vld [vmem:[#allocation2] sm:$0xff] }
  0x19   :  { %189 = vmatpush.msra.mxu3 %v92_v3  ;;  %116 = vmatpush.msra.mxu0 %v92_v3  ;;  %v201_v11 = vld [vmem:[%s406_s4] ss:$0 sm:$0xff] }
  0x1a   :  { %185 = vmatmul.msk.f32.vlgmr.msra.gmra.mxu3 %vm94_vm0, %v87_v5  ;;  %192 = vmatpush.msra.mxu2 %v89_v4 }
  0x1b   :  { %145 = vmatpush.msra.mxu1 %v89_v4  ;;  %184 = vmatmul.msk.f32.vlgmr.msra.gmra.mxu0 %vm94_vm0, %v86_v6 }
  0x1c   :  { %193 = vmatpush.msra.mxu2 %v88_v7 }
  0x1d   :  { %187 = vmatmul.msk.f32.vlgmr.msra.gmra.mxu2 %vm124_vm1, %v85_v8  ;;  %146 = vmatpush.msra.mxu1 %v88_v7 }
  0x1e   :  { %186 = vmatmul.msk.f32.vlgmr.msra.gmra.mxu1 %vm124_vm1, %v84_v9 }
  0x98   :  { %v118_v10 = vpop.f32.mrf.mxu0 }
  0x9b   :  { %v148_v12 = vpop.f32.mrf.mxu1 }
  0x9c   :  { %v149_v13 = vadd.f32 %v148_v12, %v118_v10 }
  0x9d   :  { %v121_v14 = vpop.f32.mrf.mxu3 }
  0x9e   :  { %v158_v15 = vadd.f32 %v201_v11, %v149_v13 }
  0xa0   :  { %161 = vst.msk [vmem:[#allocation10] sm:$0xff] %vm160_vm2, %v158_v15  ;;  %v151_v16 = vpop.f32.mrf.mxu2 }
  0xa1   :  { %v152_v17 = vadd.f32 %v151_v16, %v121_v14 }
  0xa3   :  { %v159_v18 = vadd.f32 %v201_v11, %v152_v17 }
  0xa5   :  { %162 = vst.msk [vmem:[#allocation10 + $0x8] sm:$0xff] %vm160_vm2, %v159_v18 }
  0xa6   :  { %166 = vsyncadd [#allocation4], 128  ;;  %s169_s15 = sshll.u32 %s407_s5, 4  ;;  %s336_s16 = smov [#allocation10]   ;;  %s170_s15 = int_to_ptr.hbm [resolvable:$true] %s169_s15 }
  0xa7   :  { %s167_s17 = sshll.u32 %s336_s16, 4  ;;  %s168_s17 = int_to_ptr.vmem [resolvable:$true] %s167_s17 }
  0xa8   :  { %175 = dma.vmem_to_hbm [thread:$0]  %s168_s17, 128, %s170_s15, [#allocation4], %s331_s23, %s331_s23, %s332_s24  }
  0xa9   :  { %328 = dma.done.wait [#allocation4], 256  }
  0xaa   :  { %329 = vsyncadd [#allocation4], 4294967040 }
  0xab   :  { %180 = vsyncpa [#allocation3], 1 }
  0xac   :  { %181 = vsyncpa [#allocation6], 1 }
  0xad   :  { %182 = vsyncpa [#allocation9], 1 }
  0xae   :  { %183 = vsyncpa [#allocation4], 1 }

</bundles_post_ra>
